<compile_context>
chip_gen: v6e
topology: v6e:2x2x1
jax: 0.10.0
libtpu: 0.0.40
codegen_flags: <defaults>
</compile_context>

<pallas_src>
import functools

import jax
import jax.numpy as jnp
from jax.experimental import pallas as pl
from jax.experimental.pallas import tpu as pltpu


_TB_MAX = 512    # rows per tile (multiple of 8)
_TD_MAX = 1024   # feature columns per tile (multiple of 128)


def _diversity_kernel(orig_ref, adv_ref, out_ref, dot_acc, no2_acc, na2_acc,
                      *, batch, feat, tb, td):
    i = pl.program_id(0)                   # batch-tile index ("parallel")
    k = pl.program_id(1)                   # feature-tile index (reduction, last)
    last_k = pl.num_programs(1) - 1

    @pl.when(k == 0)
    def _init():
        dot_acc[...] = jnp.zeros_like(dot_acc)
        no2_acc[...] = jnp.zeros_like(no2_acc)
        na2_acc[...] = jnp.zeros_like(na2_acc)

    o = orig_ref[...].astype(jnp.float32)  # [tb, td]
    a = adv_ref[...].astype(jnp.float32)

    # Per-lane partial reduction: pure VALU adds over 128-lane groups; the
    # cross-lane (XLU) reduce is deferred to the single finalize step.
    lane_groups = td // 128 if td % 128 == 0 else 0

    def partial_reduce(x):                 # [tb, td] -> [tb, acc_width]
        if lane_groups == 0:               # td == full D, single block, small
            return jnp.sum(x, axis=-1, keepdims=True)
        s = x[:, 0:128]
        for j in range(1, lane_groups):
            s = s + x[:, j * 128:(j + 1) * 128]
        return s

    def accumulate(o_blk, a_blk):
        dot_acc[...] += partial_reduce(o_blk * a_blk)
        no2_acc[...] += partial_reduce(o_blk * o_blk)
        na2_acc[...] += partial_reduce(a_blk * a_blk)

    if feat % td != 0:
        # Ragged D (implies nd >= 2): keep the mask off the steady-state path.
        @pl.when(k < last_k)
        def _steady():
            accumulate(o, a)

        @pl.when(k == last_k)
        def _ragged():
            col = jax.lax.broadcasted_iota(jnp.int32, o.shape, 1) + k * td
            valid = col < feat
            zero = jnp.float32(0.0)
            accumulate(jnp.where(valid, o, zero), jnp.where(valid, a, zero))
    else:
        accumulate(o, a)

    @pl.when(k == last_k)
    def _finalize():
        dot = jnp.sum(dot_acc[...], axis=-1, keepdims=True)   # [tb, 1]
        no2 = jnp.sum(no2_acc[...], axis=-1, keepdims=True)
        na2 = jnp.sum(na2_acc[...], axis=-1, keepdims=True)
        # 1 / max(||x||, eps) == rsqrt(max(||x||^2, eps^2)), eps = 1e-12
        # (F.normalize default). Per-row only -> lands on the idle EUP.
        eps2 = jnp.float32(1e-24)
        cos = dot * (jax.lax.rsqrt(jnp.maximum(no2, eps2)) *
                     jax.lax.rsqrt(jnp.maximum(na2, eps2)))
        if batch % tb != 0:                # static: mask B-overhang rows
            row = jax.lax.broadcasted_iota(jnp.int32, cos.shape, 0) + i * tb
            cos = jnp.where(row < batch, cos, jnp.float32(0.0))
        total = jnp.sum(cos)
        # Lane-dense, layout-legal (8,128) output tile: partial sum in [0,0],
        # zeros elsewhere, so the wrapper can just sum the whole array.
        rr = jax.lax.broadcasted_iota(jnp.int32, (8, 128), 0)
        cc = jax.lax.broadcasted_iota(jnp.int32, (8, 128), 1)
        out_ref[...] = jnp.where((rr == 0) & (cc == 0), total,
                                 jnp.float32(0.0))


def _pick_tiles(b, d, tb_max, td_max):
    tb_max = max(8, (tb_max // 8) * 8)
    td_max = max(128, (td_max // 128) * 128)

    # Feature (reduction) axis: full dim or a multiple of 128.
    td = d if d <= td_max else td_max

    # Batch axis: cap, and split into >= 2 tiles whenever possible so the
    # "parallel" grid axis can shard across both TensorCores on v7x.
    if b <= 8:
        tb = b                             # full dim (legal even if < 8)
    else:
        tb = min(b, tb_max)
        if pl.cdiv(b, tb) < 2:
            tb = ((pl.cdiv(b, 2) + 7) // 8) * 8
    return tb, td, pl.cdiv(b, tb), pl.cdiv(d, td)


def diversity_regularizer(original_features, adversarial_features,
                          tb_max=_TB_MAX, td_max=_TD_MAX):
    """Pallas implementation of DiversityRegularizer.forward (scalar f32)."""
    assert original_features.shape == adversarial_features.shape
    assert original_features.ndim == 2
    b, d = original_features.shape
    assert b > 0 and d > 0, "empty batch/feature dim is degenerate"

    tb, td, nb, nd = _pick_tiles(b, d, tb_max, td_max)
    acc_w = 128 if td % 128 == 0 else 1

    # Raise the scoped-VMEM limit only if the chosen tiles actually need it
    # (default tiles stay well under every generation's default limit).
    item = jnp.dtype(original_features.dtype).itemsize
    need = (2 * 2 * tb * td * item          # 2 inputs x 2 pipeline buffers
            + 3 * tb * acc_w * 4            # accumulators
            + 2 * 8 * 128 * 4               # output block (double buffered)
            + (1 << 20))                    # headroom
    vmem_limit = None if need <= (16 << 20) else min(need, 48 << 20)

    kernel = functools.partial(_diversity_kernel, batch=b, feat=d, tb=tb, td=td)
    partial_sums = pl.pallas_call(
        kernel,
        out_shape=jax.ShapeDtypeStruct((nb * 8, 128), jnp.float32),
        grid=(nb, nd),
        in_specs=[
            pl.BlockSpec((tb, td), lambda i, k: (i, k)),
            pl.BlockSpec((tb, td), lambda i, k: (i, k)),
        ],
        # One (8,128) partial tile per B tile; output block is resident across
        # the D (reduction) axis and written only on the last D step.
        out_specs=pl.BlockSpec((8, 128), lambda i, k: (i, 0)),
        scratch_shapes=[
            pltpu.VMEM((tb, acc_w), jnp.float32),   # dot accumulator
            pltpu.VMEM((tb, acc_w), jnp.float32),   # ||o||^2 accumulator
            pltpu.VMEM((tb, acc_w), jnp.float32),   # ||a||^2 accumulator
        ],
        compiler_params=pltpu.CompilerParams(
            dimension_semantics=("parallel", "arbitrary"),
            vmem_limit_bytes=vmem_limit),
    )(original_features, adversarial_features)

    # All entries except [8*i, 0] are zero, so a plain sum recovers the
    # per-tile partial diagonal sums.
    return jnp.sum(partial_sums) / jnp.float32(b)


def _reference(original_features, adversarial_features):
    o = original_features.astype(jnp.float32)
    a = adversarial_features.astype(jnp.float32)
    o_n = o / jnp.maximum(jnp.linalg.norm(o, axis=-1, keepdims=True), 1e-12)
    a_n = a / jnp.maximum(jnp.linalg.norm(a, axis=-1, keepdims=True), 1e-12)
    sim = o_n @ a_n.T
    return jnp.mean(jnp.diag(sim))


if __name__ == "__main__":
    key = jax.random.PRNGKey(0)
    k1, k2, k3, k4, k5, k6 = jax.random.split(key, 6)

    # Main check: shapes implied by the module (pooled features [B, D]).
    batch, hidden = 2, 32
    original_features = jax.random.normal(k1, (batch, hidden), jnp.float32)
    adversarial_features = jax.random.normal(k2, (batch, hidden), jnp.float32)
    loss = jax.block_until_ready(
        diversity_regularizer(original_features, adversarial_features))
    ref = _reference(original_features, adversarial_features)
    assert loss.shape == ()
    assert jnp.allclose(loss, ref, atol=1e-5, rtol=1e-5), (loss, ref)

    # Tiled / boundary-masked path with small explicit caps
    # (nb=3 with a partial B tile, nd=3 with a partial D tile).
    b2, d2 = 20, 320
    o2 = jax.random.normal(k3, (b2, d2), jnp.float32)
    a2 = jax.random.normal(k4, (b2, d2), jnp.float32)
    loss2 = jax.block_until_ready(
        diversity_regularizer(o2, a2, tb_max=8, td_max=128))
    ref2 = _reference(o2, a2)
    assert jnp.allclose(loss2, ref2, atol=1e-5, rtol=1e-5), (loss2, ref2)

    # Default-tile path: nb=2 (megacore split + B overhang), nd=3 with ragged
    # last D block, per-lane accumulation + deferred cross-lane reduce.
    b3, d3 = 20, 2500
    o3 = jax.random.normal(k5, (b3, d3), jnp.float32)
    a3 = jax.random.normal(k6, (b3, d3), jnp.float32)
    loss3 = jax.block_until_ready(diversity_regularizer(o3, a3))
    ref3 = _reference(o3, a3)
    assert jnp.allclose(loss3, ref3, atol=1e-5, rtol=1e-5), (loss3, ref3)

    print("KERNEL_OK")
</pallas_src>

<mosaic_0001>
module attributes {stable_mosaic.version = 11 : i64} {
  func.func @_diversity_kernel(%arg0: i32, %arg1: i32, %arg2: memref<2x32xf32, #tpu.memory_space<vmem>>, %arg3: memref<2x32xf32, #tpu.memory_space<vmem>>, %arg4: memref<8x128xf32, #tpu.memory_space<vmem>>, %arg5: memref<2x1xf32, #tpu.memory_space<vmem>>, %arg6: memref<2x1xf32, #tpu.memory_space<vmem>>, %arg7: memref<2x1xf32, #tpu.memory_space<vmem>>) attributes {dimension_semantics = [#tpu.dimension_semantics<parallel>, #tpu.dimension_semantics<arbitrary>], iteration_bounds = array<i64: 1, 1>, scalar_prefetch = 0 : i64, scratch_operands = 3 : i64, tpu.core_type = #tpu.core_type<tc>, window_params = [{transform_indices = @transform_0, window_bounds = array<i64: 2, 32>}, {transform_indices = @transform_1, window_bounds = array<i64: 2, 32>}, {transform_indices = @transform_2, window_bounds = array<i64: 8, 128>}]} {
    %c0_i32 = arith.constant 0 : i32
    %0 = arith.cmpi eq, %arg1, %c0_i32 : i32
    %1 = arith.extui %0 : i1 to i32
    %c0_i32_0 = arith.constant 0 : i32
    %2 = arith.cmpi ne, %1, %c0_i32_0 : i32
    scf.if %2 {
      %cst_20 = arith.constant 0.000000e+00 : f32
      %26 = vector.broadcast %cst_20 : f32 to vector<2x1xf32>
      %c0_21 = arith.constant 0 : index
      %c0_22 = arith.constant 0 : index
      %27 = vector.load %arg5[%c0_21, %c0_22] : memref<2x1xf32, #tpu.memory_space<vmem>>, vector<2x1xf32>
      tpu.vector_store %arg5[%c0_21, %c0_22], %26 {strides = array<i32>} : memref<2x1xf32, #tpu.memory_space<vmem>>, vector<2x1xf32>,
      %cst_23 = arith.constant 0.000000e+00 : f32
      %28 = vector.broadcast %cst_23 : f32 to vector<2x1xf32>
      %c0_24 = arith.constant 0 : index
      %c0_25 = arith.constant 0 : index
      %29 = vector.load %arg6[%c0_24, %c0_25] : memref<2x1xf32, #tpu.memory_space<vmem>>, vector<2x1xf32>
      tpu.vector_store %arg6[%c0_24, %c0_25], %28 {strides = array<i32>} : memref<2x1xf32, #tpu.memory_space<vmem>>, vector<2x1xf32>,
      %cst_26 = arith.constant 0.000000e+00 : f32
      %30 = vector.broadcast %cst_26 : f32 to vector<2x1xf32>
      %c0_27 = arith.constant 0 : index
      %c0_28 = arith.constant 0 : index
      %31 = vector.load %arg7[%c0_27, %c0_28] : memref<2x1xf32, #tpu.memory_space<vmem>>, vector<2x1xf32>
      tpu.vector_store %arg7[%c0_27, %c0_28], %30 {strides = array<i32>} : memref<2x1xf32, #tpu.memory_space<vmem>>, vector<2x1xf32>,
    } else {
    }
    %c0 = arith.constant 0 : index
    %c0_1 = arith.constant 0 : index
    %3 = vector.load %arg2[%c0, %c0_1] : memref<2x32xf32, #tpu.memory_space<vmem>>, vector<2x32xf32>
    %c0_2 = arith.constant 0 : index
    %c0_3 = arith.constant 0 : index
    %4 = vector.load %arg3[%c0_2, %c0_3] : memref<2x32xf32, #tpu.memory_space<vmem>>, vector<2x32xf32>
    %c0_4 = arith.constant 0 : index
    %c0_5 = arith.constant 0 : index
    %5 = vector.load %arg5[%c0_4, %c0_5] : memref<2x1xf32, #tpu.memory_space<vmem>>, vector<2x1xf32>
    %6 = arith.mulf %3, %4 : vector<2x32xf32>
    %cst = arith.constant dense<0.000000e+00> : vector<2xf32>
    %7 = vector.multi_reduction <add>, %6, %cst [1] : vector<2x32xf32> to vector<2xf32>
    %8 = vector.shape_cast %7 : vector<2xf32> to vector<2x1xf32>
    %9 = arith.addf %5, %8 : vector<2x1xf32>
    %c0_6 = arith.constant 0 : index
    %c0_7 = arith.constant 0 : index
    %10 = vector.load %arg5[%c0_6, %c0_7] : memref<2x1xf32, #tpu.memory_space<vmem>>, vector<2x1xf32>
    tpu.vector_store %arg5[%c0_6, %c0_7], %9 {strides = array<i32>} : memref<2x1xf32, #tpu.memory_space<vmem>>, vector<2x1xf32>,
    %c0_8 = arith.constant 0 : index
    %c0_9 = arith.constant 0 : index
    %11 = vector.load %arg6[%c0_8, %c0_9] : memref<2x1xf32, #tpu.memory_space<vmem>>, vector<2x1xf32>
    %12 = arith.mulf %3, %3 : vector<2x32xf32>
    %cst_10 = arith.constant dense<0.000000e+00> : vector<2xf32>
    %13 = vector.multi_reduction <add>, %12, %cst_10 [1] : vector<2x32xf32> to vector<2xf32>
    %14 = vector.shape_cast %13 : vector<2xf32> to vector<2x1xf32>
    %15 = arith.addf %11, %14 : vector<2x1xf32>
    %c0_11 = arith.constant 0 : index
    %c0_12 = arith.constant 0 : index
    %16 = vector.load %arg6[%c0_11, %c0_12] : memref<2x1xf32, #tpu.memory_space<vmem>>, vector<2x1xf32>
    tpu.vector_store %arg6[%c0_11, %c0_12], %15 {strides = array<i32>} : memref<2x1xf32, #tpu.memory_space<vmem>>, vector<2x1xf32>,
    %c0_13 = arith.constant 0 : index
    %c0_14 = arith.constant 0 : index
    %17 = vector.load %arg7[%c0_13, %c0_14] : memref<2x1xf32, #tpu.memory_space<vmem>>, vector<2x1xf32>
    %18 = arith.mulf %4, %4 : vector<2x32xf32>
    %cst_15 = arith.constant dense<0.000000e+00> : vector<2xf32>
    %19 = vector.multi_reduction <add>, %18, %cst_15 [1] : vector<2x32xf32> to vector<2xf32>
    %20 = vector.shape_cast %19 : vector<2xf32> to vector<2x1xf32>
    %21 = arith.addf %17, %20 : vector<2x1xf32>
    %c0_16 = arith.constant 0 : index
    %c0_17 = arith.constant 0 : index
    %22 = vector.load %arg7[%c0_16, %c0_17] : memref<2x1xf32, #tpu.memory_space<vmem>>, vector<2x1xf32>
    tpu.vector_store %arg7[%c0_16, %c0_17], %21 {strides = array<i32>} : memref<2x1xf32, #tpu.memory_space<vmem>>, vector<2x1xf32>,
    %c0_i32_18 = arith.constant 0 : i32
    %23 = arith.cmpi eq, %arg1, %c0_i32_18 : i32
    %24 = arith.extui %23 : i1 to i32
    %c0_i32_19 = arith.constant 0 : i32
    %25 = arith.cmpi ne, %24, %c0_i32_19 : i32
    scf.if %25 {
      %c0_20 = arith.constant 0 : index
      %c0_21 = arith.constant 0 : index
      %26 = vector.load %arg5[%c0_20, %c0_21] : memref<2x1xf32, #tpu.memory_space<vmem>>, vector<2x1xf32>
      %cst_22 = arith.constant dense<0.000000e+00> : vector<2xf32>
      %27 = vector.multi_reduction <add>, %26, %cst_22 [1] : vector<2x1xf32> to vector<2xf32>
      %28 = vector.shape_cast %27 : vector<2xf32> to vector<2x1xf32>
      %c0_23 = arith.constant 0 : index
      %c0_24 = arith.constant 0 : index
      %29 = vector.load %arg6[%c0_23, %c0_24] : memref<2x1xf32, #tpu.memory_space<vmem>>, vector<2x1xf32>
      %cst_25 = arith.constant dense<0.000000e+00> : vector<2xf32>
      %30 = vector.multi_reduction <add>, %29, %cst_25 [1] : vector<2x1xf32> to vector<2xf32>
      %31 = vector.shape_cast %30 : vector<2xf32> to vector<2x1xf32>
      %c0_26 = arith.constant 0 : index
      %c0_27 = arith.constant 0 : index
      %32 = vector.load %arg7[%c0_26, %c0_27] : memref<2x1xf32, #tpu.memory_space<vmem>>, vector<2x1xf32>
      %cst_28 = arith.constant dense<0.000000e+00> : vector<2xf32>
      %33 = vector.multi_reduction <add>, %32, %cst_28 [1] : vector<2x1xf32> to vector<2xf32>
      %34 = vector.shape_cast %33 : vector<2xf32> to vector<2x1xf32>
      %cst_29 = arith.constant 1.000000e-24 : f32
      %35 = vector.broadcast %cst_29 : f32 to vector<2x1xf32>
      %36 = arith.maximumf %31, %35 : vector<2x1xf32>
      %37 = math.rsqrt %36 : vector<2x1xf32>
      %cst_30 = arith.constant 1.000000e-24 : f32
      %38 = vector.broadcast %cst_30 : f32 to vector<2x1xf32>
      %39 = arith.maximumf %34, %38 : vector<2x1xf32>
      %40 = math.rsqrt %39 : vector<2x1xf32>
      %41 = arith.mulf %37, %40 : vector<2x1xf32>
      %42 = arith.mulf %28, %41 : vector<2x1xf32>
      %43 = vector.shape_cast %42 : vector<2x1xf32> to vector<1x2x1xf32>
      %cst_31 = arith.constant dense<0.000000e+00> : vector<1xf32>
      %44 = vector.multi_reduction <add>, %43, %cst_31 [1, 2] : vector<1x2x1xf32> to vector<1xf32>
      %45 = vector.shape_cast %44 : vector<1xf32> to vector<1x1x1xf32>
      %46 = vector.extract %45[0, 0, 0] : f32 from vector<1x1x1xf32>
      %47 = tpu.iota {dimensions = array<i32: 0>} : vector<8x128xi32>
      %48 = tpu.iota {dimensions = array<i32: 1>} : vector<8x128xi32>
      %c0_i32_32 = arith.constant 0 : i32
      %49 = vector.broadcast %c0_i32_32 : i32 to vector<8x128xi32>
      %50 = arith.cmpi eq, %47, %49 : vector<8x128xi32>
      %c0_i32_33 = arith.constant 0 : i32
      %51 = vector.broadcast %c0_i32_33 : i32 to vector<8x128xi32>
      %52 = arith.cmpi eq, %48, %51 : vector<8x128xi32>
      %53 = arith.andi %50, %52 : vector<8x128xi1>
      %cst_34 = arith.constant 0.000000e+00 : f32
      %54 = vector.broadcast %46 : f32 to vector<8x128xf32>
      %55 = vector.broadcast %cst_34 : f32 to vector<8x128xf32>
      %56 = arith.select %53, %54, %55 : vector<8x128xi1>, vector<8x128xf32>
      %c0_35 = arith.constant 0 : index
      %c0_36 = arith.constant 0 : index
      %57 = vector.load %arg4[%c0_35, %c0_36] : memref<8x128xf32, #tpu.memory_space<vmem>>, vector<8x128xf32>
      tpu.vector_store %arg4[%c0_35, %c0_36], %56 {strides = array<i32>} : memref<8x128xf32, #tpu.memory_space<vmem>>, vector<8x128xf32>,
    } else {
    }
    return
  }
  func.func @transform_0(%arg0: i32, %arg1: i32) -> (i32, i32) {
    %c0_i32 = arith.constant 0 : i32
    return %arg0, %arg1 : i32, i32
  }
  func.func @transform_1(%arg0: i32, %arg1: i32) -> (i32, i32) {
    %c0_i32 = arith.constant 0 : i32
    return %arg0, %arg1 : i32, i32
  }
  func.func @transform_2(%arg0: i32, %arg1: i32) -> (i32, i32) {
    %c0_i32 = arith.constant 0 : i32
    %c0_i32_0 = arith.constant 0 : i32
    return %arg0, %c0_i32 : i32, i32
  }
}

</mosaic_0001>

<bundles_post_ra>
// kernel: tpu_custom_call.1
= control target key start
LH: loop header
LB: loop body
LE: loop exit
PB: predicated region body
PF: predicated region fallthrough
CT: control target
= control target key end

     0   :  { %7 = vsyncpa [#allocation6], 0  ;;  %s231_s0 = inlined_call_operand.hbm [shape: f32[2,32], index: 0, kind: input, shape index: {}]   ;;  %s232_s1 = inlined_call_operand.hbm [shape: f32[2,32], index: 1, kind: input, shape index: {}]   ;;  %s233_s2 = inlined_call_operand.hbm [shape: f32[8,128], index: 2, kind: output, shape index: {}]  }
   0x1   :  { %8 = vsyncpa [#allocation9], 0 }
   0x2   :  { %9 = vsyncpa [#allocation7], 0  ;;  %s196_s9 = smov [#allocation5]   ;;  %s197_s11 = smov [#allocation8]  }
   0x3   :  { %s16_s10 = sshll.u32 %s196_s9, 4  ;;  %s26_s12 = sshll.u32 %s197_s11, 4  ;;  %s17_s10 = int_to_ptr.vmem [resolvable:$true] %s16_s10  ;;  %s27_s12 = int_to_ptr.vmem [resolvable:$true] %s26_s12 }
   0x4   :  { %s138_s13 = scalar_lea.vmem %s17_s10, 32  ;;  %p143_p1 = scmp.lt.s32.totalorder %s17_s10, %s17_s10 }
   0x5   :  { %p139_p0 = scmp.ne.s32.totalorder %s17_s10, %s138_s13  ;;  %p144_p2 = scmp.lt.s32.totalorder %s138_s13, %s138_s13 }
   0x7   :  { %p145_p3 = por %p144_p2, %p143_p1 }
   0x9   :  { %p146_p4 = pnand %p145_p3, %p139_p0 }
   0xb   :  { %149 = shalt.err (!%p146_p4)
}
   0xc   :  { %19 = dma.hbm_to_vmem [thread:$0]  %s231_s0, 32, %s17_s10, [#allocation6]  }
   0xd   :  { %s158_s16 = scalar_lea.vmem %s27_s12, 32  ;;  %p163_p6 = scmp.lt.s32.totalorder %s27_s12, %s27_s12 }
   0xe   :  { %p159_p5 = scmp.ne.s32.totalorder %s27_s12, %s158_s16  ;;  %p164_p7 = scmp.lt.s32.totalorder %s158_s16, %s158_s16 }
  0x10   :  { %p165_p8 = por %p164_p7, %p163_p6 }
  0x12   :  { %p166_p9 = pnand %p165_p8, %p159_p5 }
  0x14   :  { %169 = shalt.err (!%p166_p9)
}
  0x15   :  { %29 = dma.hbm_to_vmem [thread:$0]  %s232_s1, 32, %s27_s12, [#allocation9]  }
  0x16   :  { %190 = dma.done.wait [#allocation6], 32  }
  0x17   :  { %191 = vsyncadd [#allocation6], 4294967264 }
  0x18   :  { %192 = dma.done.wait [#allocation9], 32  }
  0x19   :  { %193 = vsyncadd [#allocation9], 4294967264  ;;  %vm40_vm0 = vcmask 1024   ;;  %v198_v0 = vmov 0.0   ;;  %v44_v1 = vld [vmem:[#allocation5] sm:$0x3]  ;;  %v94_v35 = vlaneseq }
  0x1a   :  { %42 = vst.msk [vmem:[#allocation3] sm:$0x3] %vm40_vm0, %v198_v0  ;;  %41 = vst.msk [vmem:[#allocation2] sm:$0x3] %vm40_vm0, %v198_v0  ;;  %vm48_vm1 = vcmask 254976   ;;  %v56_v3 = vmul.f32 %v44_v1, %v44_v1  ;;  %s199_s0 = smov [#allocation10]  }
  0x1b   :  { %43 = vst.msk [vmem:[#allocation4] sm:$0x3] %vm40_vm0, %v198_v0  ;;  %v45_v2 = vld [vmem:[#allocation8] sm:$0x3]  ;;  %v95_v36 = vshrl.u32 %v94_v35, 7  ;;  %v97_v37 = vand.u32 127, %v94_v35 }
  0x1c   :  { %v63_v4 = vmul.f32 %v45_v2, %v45_v2  ;;  %v47_v5 = vmul.f32 %v45_v2, %v44_v1  ;;  %v57_v6 = vsel %vm48_vm1, %v56_v3, 0.0  ;;  %s110_s1 = sshll.u32 %s199_s0, 4  ;;  %s111_s1 = int_to_ptr.vmem [resolvable:$true] %s110_s1 }
  0x1d   :  { %58 = vadd.xlane.f32.xlu0 %v57_v6  ;;  %vm98_vm2 = vcmp.eq.s32.totalorder %v95_v36, 0  ;;  %vm99_vm3 = vcmp.eq.s32.totalorder %v97_v37, 0  ;;  %s170_s20 = scalar_lea.vmem %s111_s1, 128  ;;  %p175_p11 = scmp.lt.s32.totalorder %s111_s1, %s111_s1 }
  0x1e   :  { %v49_v7 = vsel %vm48_vm1, %v47_v5, 0.0  ;;  %v64_v8 = vsel %vm48_vm1, %v63_v4, 0.0  ;;  %vm100_vm4 = vmand %vm98_vm2, %vm99_vm3  ;;  %p171_p10 = scmp.ne.s32.totalorder %s111_s1, %s170_s20  ;;  %p176_p12 = scmp.lt.s32.totalorder %s170_s20, %s170_s20 }
  0x1f   :  { %50 = vadd.xlane.f32.xlu1 %v49_v7 }
  0x20   :  { %p177_p13 = por %p176_p12, %p175_p11 }
  0x21   :  { %65 = vadd.xlane.f32.xlu0 %v64_v8  ;;  %v55_v9 = vld [vmem:[#allocation3] sm:$0x3]  ;;  %v46_v10 = vld [vmem:[#allocation2] sm:$0x3] }
  0x22   :  { %v62_v15 = vld [vmem:[#allocation4] sm:$0x3]  ;;  %p178_p0 = pnand %p177_p13, %p171_p10 }
  0xa6   :  { %v59_v11 = vpop.xlane.xlu0 %58 }
  0xa7   :  { %v60_v13 = vadd.f32 %v59_v11, %v55_v9 }
  0xa8   :  { %v51_v12 = vpop.xlane.xlu1 %50 }
  0xa9   :  { %v52_v14 = vadd.f32 %v51_v12, %v46_v10  ;;  %61 = vst.msk [vmem:[#allocation3] sm:$0x3] %vm40_vm0, %v60_v13 }
  0xaa   :  { %v66_v16 = vpop.xlane.xlu0 %65 }
  0xab   :  { %54 = vst.msk [vmem:[#allocation2] sm:$0x3] %vm40_vm0, %v52_v14  ;;  %v67_v17 = vadd.f32 %v66_v16, %v62_v15 }
  0xad   :  { %68 = vst.msk [vmem:[#allocation4] sm:$0x3] %vm40_vm0, %v67_v17 }
  0xb0   :  { %v74_v18 = vld [vmem:[#allocation3] sm:$0x3] }
  0xb1   :  { %v78_v19 = vmax.f32 %v74_v18, 1e-24 }
  0xb2   :  { %v72_v24 = vld [vmem:[#allocation2] sm:$0x3] }
  0xb3   :  { %126 = vrsqrt.f32 %v78_v19 }
  0xb4   :  { %v76_v20 = vld [vmem:[#allocation4] sm:$0x3] }
  0xb5   :  { %v80_v21 = vmax.f32 %v76_v20, 1e-24 }
  0xb7   :  { %128 = vrsqrt.f32 %v80_v21 }
  0xc0   :  { %v127_v22 = vpop.eup %126 }
  0xc4   :  { %v129_v23 = vpop.eup %128 }
  0xc5   :  { %v82_v25 = vmul.f32 %v129_v23, %v127_v22 }
  0xc7   :  { %v83_v26 = vmul.f32 %v82_v25, %v72_v24 }
  0xc9   :  { %v84_v27 = vsel %vm40_vm0, %v83_v26, 0.0 }
  0xca   :  { %85 = vadd.xlane.f32.xlu1 %v84_v27 }
 0x153   :  { %v86_v28 = vpop.xlane.xlu1 %85 }
 0x154   :  { %v87_v29 = vrot.slane %v86_v28, 4 }
 0x156   :  { %v88_v30 = vadd.f32 %v87_v29, %v86_v28 }
 0x158   :  { %v89_v31 = vrot.slane %v88_v30, 2 }
 0x15a   :  { %v90_v32 = vadd.f32 %v89_v31, %v88_v30 }
 0x15c   :  { %v91_v33 = vrot.slane %v90_v32, 1 }
 0x15e   :  { %v92_v34 = vadd.f32 %v91_v33, %v90_v32 }
 0x160   :  { %120 = vpush %v92_v34 }
 0x191   :  { %s121_s19 = spop %120 }
 0x192   :  { %v101_v38 = vstv %s121_s19 }
 0x193   :  { %v102_v39 = vsel %vm100_vm4, %v101_v38, 0.0 }
 0x194   :  { %103 = vst [vmem:[#allocation10] sm:$0xff] %v102_v39 }
 0x195   :  { %181 = shalt.err (!%p178_p0)
}
 0x196   :  { %113 = dma.vmem_to_hbm [thread:$0]  %s111_s1, 128, %s233_s2, [#allocation7]  }
 0x197   :  { %194 = dma.done.wait [#allocation7], 128  }
 0x198   :  { %195 = vsyncadd [#allocation7], 4294967168 }
 0x199   :  { %117 = vsyncpa [#allocation6], 1 }
 0x19a   :  { %118 = vsyncpa [#allocation9], 1 }
 0x19b   :  { %119 = vsyncpa [#allocation7], 1 }

</bundles_post_ra>
